<compile_context>
chip_gen: v6e
topology: v6e:2x2x1
jax: 0.10.0
libtpu: 0.0.40
codegen_flags: <defaults>
</compile_context>

<pallas_src>
import functools
import math

import numpy as np

import jax
import jax.numpy as jnp
from jax import lax
from jax.experimental import pallas as pl
from jax.experimental.pallas import tpu as pltpu

WINDOW_SIZE = 11
SIGMA = 1.5


# ----------------------------------------------------------------------------
# Deterministic "parameters": separable gaussian window (same math as the
# PyTorch gaussian()/create_window(), float32) as two 'same'-conv band mats.
# ----------------------------------------------------------------------------
def _round_up(x: int, m: int) -> int:
    return (x + m - 1) // m * m


def _gaussian_1d(window_size: int, sigma: float) -> np.ndarray:
    g = np.array(
        [math.exp(-((x - window_size // 2) ** 2) / (2.0 * sigma ** 2))
         for x in range(window_size)],
        dtype=np.float32,
    )
    return (g / g.sum(dtype=np.float32)).astype(np.float32)


def _conv_band_mats(H: int, W: int, ws: int, H8: int):
    """Zero-padded 'same' gaussian conv as banded matrices (pad folded in).

    mw    : (W, W)   contracts the width (lanes):  out[j] = sum_p x[p] mw[p, j]
    mht_t : (H8, H)  contracts the height (rows), pre-transposed for the
                     stage-2 GEMM; rows [H, H8) are zero (alignment rows).
    """
    pad = ws // 2
    g = _gaussian_1d(ws, SIGMA)
    mw = np.zeros((W, W), dtype=np.float32)
    mht_t = np.zeros((H8, H), dtype=np.float32)
    for j in range(W):
        for p in range(max(0, j - pad), min(W, j + pad + 1)):
            mw[p, j] = g[p - j + pad]
    for i in range(H):
        for p in range(max(0, i - pad), min(H, i + pad + 1)):
            mht_t[p, i] = g[p - i + pad]
    return mw, mht_t


# ----------------------------------------------------------------------------
# Pallas kernel: per BC-tile partial sums of ssim_map and squared error.
#   flags (SMEM, scalar prefetch): int32[2] = [max(img1)>128, min(img1)<-0.5]
#   x1, x2  : (TB*H8, W)   unpadded flattened images for this tile
#   mw      : (W, W)       width  'same'-conv band   (resident)
#   mht_t   : (H8, H)      height 'same'-conv band^T (resident)
#   out     : (1, 8, 128)  lane 0 = ssim partial sum, lane 1 = mse partial sum
#   stack   : VMEM scratch (5*TB*H8, W) holding the five conv inputs
# ----------------------------------------------------------------------------
def _fair_loss_kernel(flags_ref, x1_ref, x2_ref, mw_ref, mht_ref, out_ref,
                      stack_ref, *, tile_bc, h8, h, w, static_c1c2):
    f32 = jnp.float32
    tb = tile_bc
    tbh = tb * h8
    tbw = tb * w

    x1 = x1_ref[...]                       # (tb*h8, w) f32
    x2 = x2_ref[...]

    # Five conv inputs into persistent VMEM scratch (no concat copy).
    stack_ref[pl.ds(0 * tbh, tbh), :] = x1
    stack_ref[pl.ds(1 * tbh, tbh), :] = x2
    stack_ref[pl.ds(2 * tbh, tbh), :] = x1 * x1
    stack_ref[pl.ds(3 * tbh, tbh), :] = x2 * x2
    stack_ref[pl.ds(4 * tbh, tbh), :] = x1 * x2

    # Stage 1: width 'same' conv for all five at once: (5*tb*h8, w) @ (w, w).
    t1 = jnp.dot(stack_ref[...], mw_ref[...], preferred_element_type=f32)

    # Stage 2: height conv.  Minor-dim transpose (XLU) then ONE 2-D GEMM
    # against the pre-transposed band: (5*tb*w, h8) @ (h8, h).
    t1t = jnp.swapaxes(t1.reshape(5 * tb, h8, w), -1, -2)
    conv = jnp.dot(t1t.reshape(5 * tb * w, h8), mht_ref[...],
                   preferred_element_type=f32)            # (5*tb*w, h)

    # Everything below stays in the transposed (b, w, h) layout; only scalar
    # sums leave the kernel, so no transpose back is needed.
    mu1 = conv[0 * tbw:1 * tbw]
    mu2 = conv[1 * tbw:2 * tbw]
    s11 = conv[2 * tbw:3 * tbw]
    s22 = conv[3 * tbw:4 * tbw]
    s12 = conv[4 * tbw:5 * tbw]

    mu1_sq = mu1 * mu1
    mu2_sq = mu2 * mu2
    mu1_mu2 = mu1 * mu2
    sigma1_sq = s11 - mu1_sq
    sigma2_sq = s22 - mu2_sq
    sigma12 = s12 - mu1_mu2

    if static_c1c2 is None:
        # val_range=None logic of ssim(); range flags prefetched into SMEM.
        max_val = jnp.where(flags_ref[0] > 0, 255.0, 1.0)
        min_val = jnp.where(flags_ref[1] > 0, -1.0, 0.0)
        l_rng = max_val - min_val
        c1 = (0.01 * l_rng) ** 2
        c2 = (0.03 * l_rng) ** 2
    else:
        c1, c2 = static_c1c2

    v1 = 2.0 * sigma12 + c2
    v2 = sigma1_sq + sigma2_sq + c2
    num = (2.0 * mu1_mu2 + c1) * v1
    den = (mu1_sq + mu2_sq + c1) * v2
    ssim_map = num * pl.reciprocal(den, approx=True)      # EUP, not VALU div

    # Partial sums for this tile; alignment rows are zero in both images so
    # the squared-diff sum equals the unpadded one (normalized in wrapper).
    diff = x1 - x2
    ssim_sum = jnp.sum(ssim_map)
    mse_sum = jnp.sum(diff * diff)

    lane = lax.broadcasted_iota(jnp.int32, (8, 128), 1)
    vals = jnp.where(lane == 0, ssim_sum,
                     jnp.where(lane == 1, mse_sum, 0.0)).astype(f32)
    out_ref[...] = vals[None]


# ----------------------------------------------------------------------------
# Generation-aware tile / VMEM budgeting.
# ----------------------------------------------------------------------------
def _vmem_capacity_bytes() -> int:
    try:
        return int(pltpu.get_tpu_info().vmem_capacity_bytes)
    except Exception:
        return 128 << 20   # conservative default (v5e/v6e class)


def _pick_tile_bc(BC: int, H8: int, H: int, W: int, vmem_cap: int):
    """Largest divisor of BC whose per-step working set fits the budget and
    that leaves >= 2 grid steps (pipelining; both v7x TensorCores)."""
    per_bc = 4 * ((2 * 2) * H8 * W     # x1/x2 input tiles, double-buffered
                  + 5 * H8 * W         # 5-way stacked VMEM scratch
                  + 5 * H8 * W         # stage-1 GEMM output
                  + 5 * W * H8         # transpose intermediate
                  + 5 * W * H          # stage-2 GEMM output
                  + 12 * W * H)        # elementwise temporaries
    resident = 4 * (W * W + H8 * H + 2 * 8 * 128)
    budget = (10 << 20) if vmem_cap <= (64 << 20) else (28 << 20)
    cap = max(1, (budget - resident) // per_bc)
    cap = min(cap, 64)
    if BC > 1:
        cap = min(cap, max(1, BC // 2))   # >= 2 grid steps
    tb = 1
    for d in range(1, BC + 1):
        if BC % d == 0 and d <= cap:
            tb = d
    return tb, per_bc, resident


@functools.partial(jax.jit, static_argnames=("val_range",))
def fair_loss(input_image: jax.Array, reconstruction: jax.Array,
              val_range=None) -> jax.Array:
    """FairLoss.forward: MSE(input, recon) + (1 - SSIM(input, recon))."""
    B, C, H, W = input_image.shape
    ws = WINDOW_SIZE
    H8 = _round_up(H, 8)
    BC = B * C

    img1 = input_image.astype(jnp.float32)
    img2 = reconstruction.astype(jnp.float32)

    if val_range is None:
        # Data-range flags (val_range=None branch of ssim()); both reductions
        # read img1 once (sibling reductions fuse into one XLA pass).
        flags = jnp.stack([
            (jnp.max(img1) > 128.0).astype(jnp.int32),
            (jnp.min(img1) < -0.5).astype(jnp.int32),
        ])
        static_c1c2 = None
    else:
        flags = jnp.zeros((2,), jnp.int32)      # unused by the kernel
        static_c1c2 = (float((0.01 * val_range) ** 2),
                       float((0.03 * val_range) ** 2))

    def prep(x):
        x = x.reshape(BC, H, W)
        if H8 != H:                             # row-alignment pad only
            x = jnp.pad(x, ((0, 0), (0, H8 - H), (0, 0)))
        return x.reshape(BC * H8, W)

    x1 = prep(img1)
    x2 = prep(img2)

    mw_np, mht_np = _conv_band_mats(H, W, ws, H8)
    mw = jnp.asarray(mw_np)
    mht_t = jnp.asarray(mht_np)

    vmem_cap = _vmem_capacity_bytes()
    TB, per_bc, resident = _pick_tile_bc(BC, H8, H, W, vmem_cap)
    num_tiles = BC // TB

    est = TB * per_bc + resident
    vmem_upper = (40 << 20) if vmem_cap <= (64 << 20) else (96 << 20)
    vmem_limit = int(min(vmem_upper, max(32 << 20, 2 * est)))

    flops = int(2 * 5 * BC * H8 * W * W        # stage-1 GEMM
                + 2 * 5 * BC * W * H8 * H      # stage-2 GEMM
                + 30 * BC * H * W)             # elementwise SSIM math
    bytes_accessed = int(4 * (2 * BC * H8 * W + W * W + H8 * H
                              + num_tiles * 8 * 128) + 8)

    kernel = functools.partial(_fair_loss_kernel, tile_bc=TB, h8=H8, h=H,
                               w=W, static_c1c2=static_c1c2)

    grid_spec = pltpu.PrefetchScalarGridSpec(
        num_scalar_prefetch=1,
        grid=(num_tiles,),
        in_specs=[
            pl.BlockSpec((TB * H8, W), lambda i, fl: (i, 0)),    # x1 tile
            pl.BlockSpec((TB * H8, W), lambda i, fl: (i, 0)),    # x2 tile
            pl.BlockSpec((W, W), lambda i, fl: (0, 0)),          # mw (resident)
            pl.BlockSpec((H8, H), lambda i, fl: (0, 0)),         # mht^T (resident)
        ],
        out_specs=pl.BlockSpec((1, 8, 128), lambda i, fl: (i, 0, 0)),
        scratch_shapes=[pltpu.VMEM((5 * TB * H8, W), jnp.float32)],
    )

    parts = pl.pallas_call(
        kernel,
        out_shape=jax.ShapeDtypeStruct((num_tiles, 8, 128), jnp.float32),
        grid_spec=grid_spec,
        compiler_params=pltpu.CompilerParams(
            dimension_semantics=("parallel",),
            vmem_limit_bytes=vmem_limit),
        cost_estimate=pl.CostEstimate(flops=flops,
                                      transcendentals=int(BC * H * W),
                                      bytes_accessed=bytes_accessed),
    )(flags, x1, x2, mw, mht_t)

    n = jnp.float32(BC * H * W)
    ssim_mean = jnp.sum(parts[:, 0, 0]) / n
    mse = jnp.sum(parts[:, 0, 1]) / n
    return mse + (1.0 - ssim_mean)


# ----------------------------------------------------------------------------
# Pure-JAX reference (mirrors the PyTorch code) for a sanity check.
# ----------------------------------------------------------------------------
def _fair_loss_reference(img1, img2):
    B, C, H, W = img1.shape
    ws = WINDOW_SIZE
    pad = ws // 2
    g = jnp.asarray(_gaussian_1d(ws, SIGMA))
    w2 = jnp.outer(g, g)
    window = jnp.broadcast_to(w2[None, None], (C, 1, ws, ws))

    def conv(x):
        return lax.conv_general_dilated(
            x, window, window_strides=(1, 1), padding=[(pad, pad), (pad, pad)],
            dimension_numbers=("NCHW", "OIHW", "NCHW"), feature_group_count=C,
            precision=lax.Precision.HIGHEST)

    mu1, mu2 = conv(img1), conv(img2)
    mu1_sq, mu2_sq, mu1_mu2 = mu1 ** 2, mu2 ** 2, mu1 * mu2
    sigma1_sq = conv(img1 * img1) - mu1_sq
    sigma2_sq = conv(img2 * img2) - mu2_sq
    sigma12 = conv(img1 * img2) - mu1_mu2
    max_val = jnp.where(jnp.max(img1) > 128.0, 255.0, 1.0)
    min_val = jnp.where(jnp.min(img1) < -0.5, -1.0, 0.0)
    l_rng = max_val - min_val
    c1, c2 = (0.01 * l_rng) ** 2, (0.03 * l_rng) ** 2
    v1 = 2.0 * sigma12 + c2
    v2 = sigma1_sq + sigma2_sq + c2
    ssim_map = (2.0 * mu1_mu2 + c1) * v1 / ((mu1_sq + mu2_sq + c1) * v2)
    mse = jnp.mean((img1 - img2) ** 2)
    return mse + (1.0 - jnp.mean(ssim_map))


if __name__ == "__main__":
    key = jax.random.PRNGKey(0)
    k1, k2 = jax.random.split(key)
    input_image = jax.random.normal(k1, (2, 4, 16, 16), dtype=jnp.float32)
    reconstruction = input_image + 0.1 * jax.random.normal(
        k2, (2, 4, 16, 16), dtype=jnp.float32)

    loss = jax.block_until_ready(fair_loss(input_image, reconstruction))
    ref = jax.block_until_ready(_fair_loss_reference(input_image, reconstruction))

    assert jnp.isfinite(loss), "non-finite loss"
    # Default-precision MXU convs + approx reciprocal (~2^-12 rel) vs. the
    # HIGHEST-precision reference.
    assert abs(float(loss) - float(ref)) <= 1e-2 * max(1.0, abs(float(ref))), (
        float(loss), float(ref))
    print("KERNEL_OK")
</pallas_src>

<mosaic_0001>
module attributes {stable_mosaic.version = 11 : i64} {
  func.func @_fair_loss_kernel(%arg0: i32, %arg1: memref<2xi32, #tpu.memory_space<smem>>, %arg2: memref<64x16xf32, #tpu.memory_space<vmem>>, %arg3: memref<64x16xf32, #tpu.memory_space<vmem>>, %arg4: memref<16x16xf32, #tpu.memory_space<vmem>>, %arg5: memref<16x16xf32, #tpu.memory_space<vmem>>, %arg6: memref<1x8x128xf32, #tpu.memory_space<vmem>>, %arg7: memref<320x16xf32, #tpu.memory_space<vmem>>) attributes {dimension_semantics = [#tpu.dimension_semantics<parallel>], iteration_bounds = array<i64: 2>, scalar_prefetch = 1 : i64, scratch_operands = 1 : i64, tpu.core_type = #tpu.core_type<tc>, window_params = [{transform_indices = @transform_0, window_bounds = array<i64: 64, 16>}, {transform_indices = @transform_1, window_bounds = array<i64: 64, 16>}, {pipeline_mode = #tpu.pipeline_mode<synchronous>, transform_indices = @transform_2, window_bounds = array<i64: 16, 16>}, {pipeline_mode = #tpu.pipeline_mode<synchronous>, transform_indices = @transform_3, window_bounds = array<i64: 16, 16>}, {transform_indices = @transform_4, window_bounds = array<i64: 1, 8, 128>}]} {
    %c0 = arith.constant 0 : index
    %c0_0 = arith.constant 0 : index
    %0 = vector.load %arg2[%c0, %c0_0] : memref<64x16xf32, #tpu.memory_space<vmem>>, vector<64x16xf32>
    %c0_1 = arith.constant 0 : index
    %c0_2 = arith.constant 0 : index
    %1 = vector.load %arg3[%c0_1, %c0_2] : memref<64x16xf32, #tpu.memory_space<vmem>>, vector<64x16xf32>
    %c0_3 = arith.constant 0 : index
    %c0_4 = arith.constant 0 : index
    %2 = vector.load %arg7[%c0_3, %c0_4] : memref<320x16xf32, #tpu.memory_space<vmem>>, vector<64x16xf32>
    tpu.vector_store %arg7[%c0_3, %c0_4], %0 {strides = array<i32>} : memref<320x16xf32, #tpu.memory_space<vmem>>, vector<64x16xf32>,
    %c64 = arith.constant 64 : index
    %c0_5 = arith.constant 0 : index
    %3 = vector.load %arg7[%c64, %c0_5] : memref<320x16xf32, #tpu.memory_space<vmem>>, vector<64x16xf32>
    tpu.vector_store %arg7[%c64, %c0_5], %1 {strides = array<i32>} : memref<320x16xf32, #tpu.memory_space<vmem>>, vector<64x16xf32>,
    %4 = arith.mulf %0, %0 : vector<64x16xf32>
    %c128 = arith.constant 128 : index
    %c0_6 = arith.constant 0 : index
    %5 = vector.load %arg7[%c128, %c0_6] : memref<320x16xf32, #tpu.memory_space<vmem>>, vector<64x16xf32>
    tpu.vector_store %arg7[%c128, %c0_6], %4 {strides = array<i32>} : memref<320x16xf32, #tpu.memory_space<vmem>>, vector<64x16xf32>,
    %6 = arith.mulf %1, %1 : vector<64x16xf32>
    %c192 = arith.constant 192 : index
    %c0_7 = arith.constant 0 : index
    %7 = vector.load %arg7[%c192, %c0_7] : memref<320x16xf32, #tpu.memory_space<vmem>>, vector<64x16xf32>
    tpu.vector_store %arg7[%c192, %c0_7], %6 {strides = array<i32>} : memref<320x16xf32, #tpu.memory_space<vmem>>, vector<64x16xf32>,
    %8 = arith.mulf %0, %1 : vector<64x16xf32>
    %c256 = arith.constant 256 : index
    %c0_8 = arith.constant 0 : index
    %9 = vector.load %arg7[%c256, %c0_8] : memref<320x16xf32, #tpu.memory_space<vmem>>, vector<64x16xf32>
    tpu.vector_store %arg7[%c256, %c0_8], %8 {strides = array<i32>} : memref<320x16xf32, #tpu.memory_space<vmem>>, vector<64x16xf32>,
    %c0_9 = arith.constant 0 : index
    %c0_10 = arith.constant 0 : index
    %10 = vector.load %arg7[%c0_9, %c0_10] : memref<320x16xf32, #tpu.memory_space<vmem>>, vector<320x16xf32>
    %c0_11 = arith.constant 0 : index
    %c0_12 = arith.constant 0 : index
    %11 = vector.load %arg4[%c0_11, %c0_12] : memref<16x16xf32, #tpu.memory_space<vmem>>, vector<16x16xf32>
    %cst = arith.constant dense<0.000000e+00> : vector<320x16xf32>
    %12 = tpu.matmul %10, %11, %cst {dimension_numbers = #tpu.dot_dimension_numbers<[1], [0], [0], [1], [0, 0, 1, 1], [], []>} : vector<320x16xf32>, vector<16x16xf32>, vector<320x16xf32> -> vector<320x16xf32>
    %13 = vector.shape_cast %12 : vector<320x16xf32> to vector<20x16x16xf32>
    %14 = tpu.transpose %13, [0, 2, 1] : vector<20x16x16xf32> -> vector<20x16x16xf32>
    %15 = vector.shape_cast %14 : vector<20x16x16xf32> to vector<320x16xf32>
    %c0_13 = arith.constant 0 : index
    %c0_14 = arith.constant 0 : index
    %16 = vector.load %arg5[%c0_13, %c0_14] : memref<16x16xf32, #tpu.memory_space<vmem>>, vector<16x16xf32>
    %cst_15 = arith.constant dense<0.000000e+00> : vector<320x16xf32>
    %17 = tpu.matmul %15, %16, %cst_15 {dimension_numbers = #tpu.dot_dimension_numbers<[1], [0], [0], [1], [0, 0, 1, 1], [], []>} : vector<320x16xf32>, vector<16x16xf32>, vector<320x16xf32> -> vector<320x16xf32>
    %18 = vector.extract_strided_slice %17 {offsets = [0, 0], sizes = [64, 16], strides = [1, 1]} : vector<320x16xf32> to vector<64x16xf32>
    %19 = vector.extract_strided_slice %17 {offsets = [64, 0], sizes = [64, 16], strides = [1, 1]} : vector<320x16xf32> to vector<64x16xf32>
    %20 = vector.extract_strided_slice %17 {offsets = [128, 0], sizes = [64, 16], strides = [1, 1]} : vector<320x16xf32> to vector<64x16xf32>
    %21 = vector.extract_strided_slice %17 {offsets = [192, 0], sizes = [64, 16], strides = [1, 1]} : vector<320x16xf32> to vector<64x16xf32>
    %22 = vector.extract_strided_slice %17 {offsets = [256, 0], sizes = [64, 16], strides = [1, 1]} : vector<320x16xf32> to vector<64x16xf32>
    %23 = arith.mulf %18, %18 : vector<64x16xf32>
    %24 = arith.mulf %19, %19 : vector<64x16xf32>
    %25 = arith.mulf %18, %19 : vector<64x16xf32>
    %26 = arith.subf %20, %23 : vector<64x16xf32>
    %27 = arith.subf %21, %24 : vector<64x16xf32>
    %28 = arith.subf %22, %25 : vector<64x16xf32>
    %c0_16 = arith.constant 0 : index
    %29 = memref.load %arg1[%c0_16] : memref<2xi32, #tpu.memory_space<smem>>
    %c0_i32 = arith.constant 0 : i32
    %30 = arith.cmpi sgt, %29, %c0_i32 : i32
    %cst_17 = arith.constant 2.550000e+02 : f32
    %cst_18 = arith.constant 1.000000e+00 : f32
    %31 = arith.select %30, %cst_17, %cst_18 : f32
    %c1 = arith.constant 1 : index
    %32 = memref.load %arg1[%c1] : memref<2xi32, #tpu.memory_space<smem>>
    %c0_i32_19 = arith.constant 0 : i32
    %33 = arith.cmpi sgt, %32, %c0_i32_19 : i32
    %cst_20 = arith.constant -1.000000e+00 : f32
    %cst_21 = arith.constant 0.000000e+00 : f32
    %34 = arith.select %33, %cst_20, %cst_21 : f32
    %35 = arith.subf %31, %34 : f32
    %cst_22 = arith.constant 0.00999999977 : f32
    %36 = arith.mulf %cst_22, %35 : f32
    %37 = arith.mulf %36, %36 : f32
    %cst_23 = arith.constant 3.000000e-02 : f32
    %38 = arith.mulf %cst_23, %35 : f32
    %39 = arith.mulf %38, %38 : f32
    %cst_24 = arith.constant 2.000000e+00 : f32
    %40 = vector.broadcast %cst_24 : f32 to vector<64x16xf32>
    %41 = arith.mulf %40, %28 : vector<64x16xf32>
    %42 = vector.broadcast %39 : f32 to vector<64x16xf32>
    %43 = arith.addf %41, %42 : vector<64x16xf32>
    %44 = arith.addf %26, %27 : vector<64x16xf32>
    %45 = vector.broadcast %39 : f32 to vector<64x16xf32>
    %46 = arith.addf %44, %45 : vector<64x16xf32>
    %cst_25 = arith.constant 2.000000e+00 : f32
    %47 = vector.broadcast %cst_25 : f32 to vector<64x16xf32>
    %48 = arith.mulf %47, %25 : vector<64x16xf32>
    %49 = vector.broadcast %37 : f32 to vector<64x16xf32>
    %50 = arith.addf %48, %49 : vector<64x16xf32>
    %51 = arith.mulf %50, %43 : vector<64x16xf32>
    %52 = arith.addf %23, %24 : vector<64x16xf32>
    %53 = vector.broadcast %37 : f32 to vector<64x16xf32>
    %54 = arith.addf %52, %53 : vector<64x16xf32>
    %55 = arith.mulf %54, %46 : vector<64x16xf32>
    %56 = tpu.reciprocal %55 {approx = true} : vector<64x16xf32> -> vector<64x16xf32>
    %57 = arith.mulf %51, %56 : vector<64x16xf32>
    %58 = arith.subf %0, %1 : vector<64x16xf32>
    %59 = vector.shape_cast %57 : vector<64x16xf32> to vector<1x64x16xf32>
    %cst_26 = arith.constant dense<0.000000e+00> : vector<1xf32>
    %60 = vector.multi_reduction <add>, %59, %cst_26 [1, 2] : vector<1x64x16xf32> to vector<1xf32>
    %61 = vector.shape_cast %60 : vector<1xf32> to vector<1x1x1xf32>
    %62 = vector.extract %61[0, 0, 0] : f32 from vector<1x1x1xf32>
    %63 = arith.mulf %58, %58 : vector<64x16xf32>
    %64 = vector.shape_cast %63 : vector<64x16xf32> to vector<1x64x16xf32>
    %cst_27 = arith.constant dense<0.000000e+00> : vector<1xf32>
    %65 = vector.multi_reduction <add>, %64, %cst_27 [1, 2] : vector<1x64x16xf32> to vector<1xf32>
    %66 = vector.shape_cast %65 : vector<1xf32> to vector<1x1x1xf32>
    %67 = vector.extract %66[0, 0, 0] : f32 from vector<1x1x1xf32>
    %68 = tpu.iota {dimensions = array<i32: 1>} : vector<8x128xi32>
    %c0_i32_28 = arith.constant 0 : i32
    %69 = vector.broadcast %c0_i32_28 : i32 to vector<8x128xi32>
    %70 = arith.cmpi eq, %68, %69 : vector<8x128xi32>
    %c1_i32 = arith.constant 1 : i32
    %71 = vector.broadcast %c1_i32 : i32 to vector<8x128xi32>
    %72 = arith.cmpi eq, %68, %71 : vector<8x128xi32>
    %cst_29 = arith.constant 0.000000e+00 : f32
    %73 = vector.broadcast %67 : f32 to vector<8x128xf32>
    %74 = vector.broadcast %cst_29 : f32 to vector<8x128xf32>
    %75 = arith.select %72, %73, %74 : vector<8x128xi1>, vector<8x128xf32>
    %76 = vector.broadcast %62 : f32 to vector<8x128xf32>
    %77 = arith.select %70, %76, %75 : vector<8x128xi1>, vector<8x128xf32>
    %78 = vector.shape_cast %77 : vector<8x128xf32> to vector<1x8x128xf32>
    %c0_30 = arith.constant 0 : index
    %c0_31 = arith.constant 0 : index
    %c0_32 = arith.constant 0 : index
    %79 = vector.load %arg6[%c0_30, %c0_31, %c0_32] : memref<1x8x128xf32, #tpu.memory_space<vmem>>, vector<1x8x128xf32>
    tpu.vector_store %arg6[%c0_30, %c0_31, %c0_32], %78 {strides = array<i32>} : memref<1x8x128xf32, #tpu.memory_space<vmem>>, vector<1x8x128xf32>,
    return
  }
  func.func @transform_0(%arg0: i32, %arg1: memref<2xi32, #tpu.memory_space<smem>>) -> (i32, i32) {
    %c0_i32 = arith.constant 0 : i32
    %c0_i32_0 = arith.constant 0 : i32
    return %arg0, %c0_i32 : i32, i32
  }
  func.func @transform_1(%arg0: i32, %arg1: memref<2xi32, #tpu.memory_space<smem>>) -> (i32, i32) {
    %c0_i32 = arith.constant 0 : i32
    %c0_i32_0 = arith.constant 0 : i32
    return %arg0, %c0_i32 : i32, i32
  }
  func.func @transform_2(%arg0: i32, %arg1: memref<2xi32, #tpu.memory_space<smem>>) -> (i32, i32) {
    %c0_i32 = arith.constant 0 : i32
    %c0_i32_0 = arith.constant 0 : i32
    %c0_i32_1 = arith.constant 0 : i32
    return %c0_i32, %c0_i32_0 : i32, i32
  }
  func.func @transform_3(%arg0: i32, %arg1: memref<2xi32, #tpu.memory_space<smem>>) -> (i32, i32) {
    %c0_i32 = arith.constant 0 : i32
    %c0_i32_0 = arith.constant 0 : i32
    %c0_i32_1 = arith.constant 0 : i32
    return %c0_i32, %c0_i32_0 : i32, i32
  }
  func.func @transform_4(%arg0: i32, %arg1: memref<2xi32, #tpu.memory_space<smem>>) -> (i32, i32, i32) {
    %c0_i32 = arith.constant 0 : i32
    %c0_i32_0 = arith.constant 0 : i32
    %c0_i32_1 = arith.constant 0 : i32
    return %arg0, %c0_i32, %c0_i32_0 : i32, i32, i32
  }
}

</mosaic_0001>

<bundles_post_ra>
// kernel: fair_loss.1
= control target key start
LH: loop header
LB: loop body
LE: loop exit
PB: predicated region body
PF: predicated region fallthrough
CT: control target
= control target key end

     0   :  { %s3072_s0 = inlined_call_operand.vmem [shape: s32[2], index: 0, kind: input, shape index: {}]   ;;  %s3073_s1 = inlined_call_operand.vmem [shape: f32[128,16], index: 1, kind: input, shape index: {}]   ;;  %s3074_s2 = inlined_call_operand.hbm [shape: f32[128,16], index: 2, kind: input, shape index: {}]   ;;  %s3075_s3 = inlined_call_operand.vmem [shape: f32[16,16], index: 3, kind: input, shape index: {}, may-alias: {3,4}]   ;;  %s3076_s4 = inlined_call_operand.vmem [shape: f32[16,16], index: 4, kind: input, shape index: {}, may-alias: {3,4}]   ;;  %s3077_s5 = inlined_call_operand.vmem [shape: f32[2,8,128], index: 5, kind: output, shape index: {}]  }
   0x1   :  { %s10_s20 = sshll.u32 %s3072_s0, 4  ;;  %s11_s20 = int_to_ptr.vmem [resolvable:$true] %s10_s20 }
   0x2   :  { %s2458_s21 = scalar_lea.vmem %s11_s20, 16  ;;  %p2463_p1 = scmp.lt.s32.totalorder %s11_s20, %s11_s20 }
   0x3   :  { %p2459_p0 = scmp.ne.s32.totalorder %s11_s20, %s2458_s21  ;;  %p2464_p2 = scmp.lt.s32.totalorder %s2458_s21, %s2458_s21 }
   0x5   :  { %p2465_p3 = por %p2464_p2, %p2463_p1 }
   0x7   :  { %p2466_p4 = pnand %p2465_p3, %p2459_p0 }
   0x9   :  { %2469 = shalt.err (!%p2466_p4)  }
   0xa   :  { %s2536_s22 = smov [#allocation4]  }
   0xb   :  { %13 = dma.vmem_to_smem %s11_s20, 16, %s2536_s22, [#allocation3] }
   0xc   :  { %2514 = dma.done.wait [#allocation3], 16 }
   0xd   :  { %2515 = vsyncadd [#allocation3], 4294967280 }
   0xe   :  { %15 = sfence }
   0xf   :  { %16 = vsyncpa [#allocation6], 0 }
  0x10   :  { %18 = vsyncpa [#allocation6 + $0x1], 0  ;;  %s2573_s23 = smov 0   ;;  %s2575_s24 = smov 0  }
  0x11   :  { %s2577_s0 = smov 0   ;;  %s2579_s25 = smov 0  }
  0x12 LB: > { %s2592_s26 = sadd.s32 4294967295, %s2534_s25   ;;  %s2595_s27 = sadd.s32 1, %s2534_s25   ;;  %s2534_s25 = sphi %s2579_s25, %s3086_s25   ;;  %s2530_s0 = sphi %s2577_s0, %s3085_s0   ;;  %s2526_s24 = sphi %s2575_s24, %s3084_s24   ;;  %s2522_s23 = sphi %s2573_s23, %s3083_s23  }
  0x13   : > { %s54_s28 = ssub.s32 %s2534_s25, %s2595_s27  ;;  %s57_s29 = sadd.s32 1, %s2530_s0 }
  0x14   : > { %p55_p5 = scmp.eq.s32.totalorder %s54_s28, 0  ;;  %p64_p6 = scmp.ne.s32.totalorder %s2530_s0, %s2526_s24 }
  0x15   : > { %p65_p7 = scmp.eq.s32.totalorder %s2534_s25, 0  ;;  %p70_p8 = scmp.ne.s32.totalorder %s2526_s24, %s2522_s23 }
  0x16   : > { %s2605_s30 = scalar_select %p55_p5, %s2530_s0, %s57_s29  }
  0x17   : > { %p66_p9 = por %p65_p7, %p64_p6  ;;  %p71_p10 = scmp.eq.s32.totalorder %s2592_s26, 0 }
  0x18   : > { %p2405_p11 = scmp.lt.s32.totalorder %s2534_s25, 2  ;;  %s177_s7 = sand.u32 1, %s2530_s0  }
  0x19   : > { %p2609_p12 = por %p71_p10, %p70_p8  ;;  %s2091_s8 = sshll.u32 %s177_s7, 6 }
  0x1a   : > { %s2182_s9 = sshll.u32 %s2534_s25, 10  ;;  %s181_s13 = scalar_lea.vmem [#allocation5], %s2091_s8 }
  0x1b   : > { %s3079_s6 = scalar_select %p2609_p12, 1, 0 }
  0x1c   : > { %s2618_s12 = scalar_lea.hbm %s3074_s2, %s2182_s9  ;;  %s188_s14 = sshll.u32 %s181_s13, 4  ;;  %s2620_s14 = int_to_ptr.vmem [resolvable:$true] %s188_s14 }
  0x1d   : > { %p2622_p13 = pnand %p2405_p11, %p66_p9  ;;  %s2627_s16 = scalar_lea.sflag [#allocation6], %s177_s7 }
  0x1e   : > { %s2470_s17 = scalar_lea.hbm %s2618_s12, 1024  ;;  %s2475_s20 = scalar_lea.hbm %s3074_s2, 2048 }
  0x1f   : > { %p2471_p1 = scmp.ne.s32.totalorder %s2618_s12, %s2470_s17  ;;  %p2472_p2 = pneg %p2622_p13 }
  0x20   : > { %p2476_p5 = scmp.lt.s32.totalorder %s2618_s12, %s3074_s2  ;;  %p2477_p6 = scmp.lt.s32.totalorder %s2475_s20, %s2470_s17 }
  0x21   : > { %p2473_p3 = pnand %p2472_p2, %p2471_p1 }
  0x22   : > { %p2478_p7 = por %p2477_p6, %p2476_p5 }
  0x23   : > { %p2474_p4 = pneg %p2473_p3 }
  0x25   : > { %p2479_p8 = pnand %p2478_p7, %p2474_p4 }
  0x27   : > { %2482 = shalt.err (!%p2479_p8)
}
  0x28   : > { %s2483_s23 = scalar_lea.vmem %s2620_s14, 1024  ;;  %s2537_s28 = smov [#allocation5]  }
  0x29   : > { %p2484_p9 = scmp.ne.s32.totalorder %s2620_s14, %s2483_s23  ;;  %s2488_s29 = sshll.u32 %s2537_s28, 4  ;;  %s2489_s29 = int_to_ptr.vmem [resolvable:$false] %s2488_s29 }
  0x2a   : > { %s2490_s7 = scalar_lea.vmem %s2489_s29, 2048  ;;  %p2491_p1 = scmp.lt.s32.totalorder %s2620_s14, %s2489_s29 }
  0x2b   : > { %p2486_p10 = pnand %p2484_p9, %p2472_p2  ;;  %p2492_p3 = scmp.lt.s32.totalorder %s2490_s7, %s2483_s23 }
  0x2d   : > { %p2487_p11 = pneg %p2486_p10  ;;  %p2493_p0 = por %p2492_p3, %p2491_p1 }
  0x2f   : > { %p2494_p12 = pnand %p2493_p0, %p2487_p11 }
  0x31   : > { %2497 = shalt.err (!%p2494_p12)
}
  0x32   : > { %s2538_s8 = smov 128   ;;  %s2539_s9 = smov 8  }
  0x33   : > { %2404 = dma.hbm_to_vmem [thread:$0]  (!%p2622_p13), %s2618_s12, 1024, %s2620_s14, %s2627_s16, %s2538_s8, %s2538_s8, %s2539_s9  }
  0x34   : > { %p196_p2 = scmp.lt.s32.totalorder %s2534_s25, 3  ;;  %p3081_p4 = scmp.ge.s32.totalorder %s2534_s25, 1 }
  0x36   : > { %p197_p5 = pnand %p3081_p4, %p196_p2 }
  0x37   : > { %s202_s10 = sand.u32 (!%p197_p5), 1, %s2526_s24   ;;  %p3082_p12 = scmp.ne.s32.totalorder (!%p197_p5), %s3079_s6, 0 }
  0x38   : > { %200 = sbr.rel (%p197_p5) target bundleno = 894 (0x37e), region = 36  ;;  %s2095_s11 = sshll.u32 (!%p197_p5), %s202_s10, 6 }
  0x39   : > { %s203_s13 = scalar_lea.sflag (!%p197_p5), [#allocation6], %s202_s10  ;;  %s2652_s17 = scalar_lea.vmem (!%p197_p5), [#allocation5], %s2095_s11 }
  0x3d   : > { %2517 = dma.done.wait (%p3082_p12), %s203_s13, 1024  }
  0x3e   : > { %2519 = vsyncadd (%p3082_p12), %s203_s13, 4294966272  ;;  %s2096_s18 = sshll.u32 %s2592_s26, 3  ;;  %vm262_vm0 = vcmask 130048   ;;  %v368_v0 = vld [vmem:[%s3075_s3 + $0x8] sm:$0xff]  ;;  %v367_v1 = vld [vmem:[%s3075_s3] sm:$0xff]  ;;  %s1829_s29 = sld [smem:[#allocation4]] }
  0x3f   : > { %p236_p0 = scmp.lt.s32.totalorder %s2096_s18, 15  ;;  %2267 = vmatprep.subr.mxu0 %v368_v0  ;;  %v2707_v14 = vld [vmem:[%s2652_s17] sm:$0xff]  ;;  %v2710_v15 = vld [vmem:[%s2652_s17 + $0x8] sm:$0xff]  ;;  %v2726_v19 = vld [vmem:[%s2652_s17 + $0x10] sm:$0xff]  ;;  %s2179_s7 = sld [smem:[#allocation4 + $0x1]] }
  0x40   : > { %2268 = vmatpush3.msra.mxu0 %v368_v0  ;;  %271 = vst.msk [vmem:[#allocation2 + $0x40] sm:$0xff] %vm262_vm0, %v2707_v14  ;;  %272 = vst.msk [vmem:[#allocation2 + $0x48] sm:$0xff] %vm262_vm0, %v2710_v15  ;;  %v2729_v20 = vld [vmem:[%s2652_s17 + $0x18] sm:$0xff]  ;;  %v2732_v21 = vld [vmem:[%s2652_s17 + $0x20] sm:$0xff]  ;;  %v295_v23 = vmul.f32 %v2707_v14, %v2707_v14  ;;  %v296_v24 = vmul.f32 %v2710_v15, %v2710_v15  ;;  %v297_v29 = vmul.f32 %v2726_v19, %v2726_v19  ;;  %p242_p7 = scmp.lt.s32.totalorder %s2592_s26, 1 }
  0x41   : > { %s3088_s18 = smov (!%p236_p0, %s2096_s18), 15  ;;  %2269 = vmatprep.subr.mxu0 %v367_v1  ;;  %273 = vst.msk [vmem:[#allocation2 + $0x50] sm:$0xff] %vm262_vm0, %v2726_v19  ;;  %274 = vst.msk [vmem:[#allocation2 + $0x58] sm:$0xff] %vm262_vm0, %v2729_v20  ;;  %v2752_v26 = vld [vmem:[%s2652_s17 + $0x28] sm:$0xff]  ;;  %v2755_v27 = vld [vmem:[%s2652_s17 + $0x30] sm:$0xff]  ;;  %v298_v30 = vmul.f32 %v2729_v20, %v2729_v20  ;;  %v299_v31 = vmul.f32 %v2732_v21, %v2732_v21 }
  0x42   : > { %s2097_s12 = sshll.u32 %s3088_s18, 3  ;;  %2270 = vmatpush3.msra.mxu0 %v367_v1  ;;  %275 = vst.msk [vmem:[#allocation2 + $0x60] sm:$0xff] %vm262_vm0, %v2732_v21  ;;  %v2758_v28 = vld [vmem:[%s2652_s17 + $0x38] sm:$0xff]  ;;  %276 = vst.msk [vmem:[#allocation2 + $0x68] sm:$0xff] %vm262_vm0, %v2752_v26  ;;  %v300_v33 = vmul.f32 %v2752_v26, %v2752_v26  ;;  %v301_v34 = vmul.f32 %v2755_v27, %v2755_v27  ;;  %s3090_s26 = smov (!%p242_p7, %s2592_s26), 1 }
  0x43   : > { %s239_s15 = scalar_lea.vmem %s3073_s1, %s2097_s12  ;;  %277 = vst.msk [vmem:[#allocation2 + $0x70] sm:$0xff] %vm262_vm0, %v2755_v27  ;;  %278 = vst.msk [vmem:[#allocation2 + $0x78] sm:$0xff] %vm262_vm0, %v2758_v28  ;;  %v302_v35 = vmul.f32 %v2758_v28, %v2758_v28  ;;  %s2098_s12 = sshll.u32 %s3090_s26, 3 }
  0x44   : > { %v2668_v2 = vld [vmem:[%s239_s15] sm:$0xff]  ;;  %v2672_v3 = vld [vmem:[%s239_s15 + $0x8] sm:$0xff]  ;;  %v2674_v4 = vld [vmem:[%s239_s15 + $0x10] sm:$0xff]  ;;  %303 = vst.msk [vmem:[#allocation2 + $0xc0] sm:$0xff] %vm262_vm0, %v295_v23  ;;  %p1830_p13 = scmp.gt.s32.totalorder %s1829_s29, 0  ;;  %s245_s19 = scalar_lea.vmem %s3077_s5, %s2098_s12 }
  0x45   : > { %263 = vst.msk [vmem:[#allocation2] sm:$0xff] %vm262_vm0, %v2668_v2  ;;  %v2676_v5 = vld [vmem:[%s239_s15 + $0x18] sm:$0xff]  ;;  %v279_v6 = vmul.f32 %v2668_v2, %v2668_v2  ;;  %264 = vst.msk [vmem:[#allocation2 + $0x8] sm:$0xff] %vm262_vm0, %v2672_v3  ;;  %v2686_v7 = vld [vmem:[%s239_s15 + $0x20] sm:$0xff]  ;;  %v280_v10 = vmul.f32 %v2672_v3, %v2672_v3  ;;  %v281_v11 = vmul.f32 %v2674_v4, %v2674_v4  ;;  %p1833_p6 = scmp.gt.s32.totalorder %s2179_s7, 0 }
  0x46   : > { %265 = vst.msk [vmem:[#allocation2 + $0x10] sm:$0xff] %vm262_vm0, %v2674_v4  ;;  %266 = vst.msk [vmem:[#allocation2 + $0x18] sm:$0xff] %vm262_vm0, %v2676_v5  ;;  %v2688_v8 = vld [vmem:[%s239_s15 + $0x28] sm:$0xff]  ;;  %v2690_v9 = vld [vmem:[%s239_s15 + $0x30] sm:$0xff]  ;;  %v282_v12 = vmul.f32 %v2676_v5, %v2676_v5  ;;  %v283_v16 = vmul.f32 %v2686_v7, %v2686_v7  ;;  %v311_v25 = vmul.f32 %v2707_v14, %v2668_v2  ;;  %s1831_s8 = scalar_select %p1830_p13, 255.0, 1.0 }
  0x47   : > { %267 = vst.msk [vmem:[#allocation2 + $0x20] sm:$0xff] %vm262_vm0, %v2686_v7  ;;  %268 = vst.msk [vmem:[#allocation2 + $0x28] sm:$0xff] %vm262_vm0, %v2688_v8  ;;  %v2704_v13 = vld [vmem:[%s239_s15 + $0x38] sm:$0xff]  ;;  %v284_v17 = vmul.f32 %v2688_v8, %v2688_v8  ;;  %v285_v18 = vmul.f32 %v2690_v9, %v2690_v9  ;;  %v312_v32 = vmul.f32 %v2710_v15, %v2672_v3  ;;  %v335_v50 = vld [vmem:[#allocation2 + $0x40] sm:$0xff]  ;;  %s1834_s9 = scalar_select %p1833_p6, -1.0, 0.0 }
  0x48   : > { %269 = vst.msk [vmem:[#allocation2 + $0x30] sm:$0xff] %vm262_vm0, %v2690_v9  ;;  %287 = vst.msk [vmem:[#allocation2 + $0x80] sm:$0xff] %vm262_vm0, %v279_v6  ;;  %v286_v22 = vmul.f32 %v2704_v13, %v2704_v13  ;;  %v313_v36 = vmul.f32 %v2726_v19, %v2674_v4  ;;  %v314_v37 = vmul.f32 %v2729_v20, %v2676_v5  ;;  %v336_v51 = vld [vmem:[#allocation2 + $0x48] sm:$0xff]  ;;  %v337_v52 = vld [vmem:[#allocation2 + $0x50] sm:$0xff] }
  0x49   : > { %270 = vst.msk [vmem:[#allocation2 + $0x38] sm:$0xff] %vm262_vm0, %v2704_v13  ;;  %288 = vst.msk [vmem:[#allocation2 + $0x88] sm:$0xff] %vm262_vm0, %v280_v10  ;;  %v315_v38 = vmul.f32 %v2732_v21, %v2686_v7  ;;  %v316_v39 = vmul.f32 %v2752_v26, %v2688_v8  ;;  %v317_v40 = vmul.f32 %v2755_v27, %v2690_v9  ;;  %v338_v53 = vld [vmem:[#allocation2 + $0x58] sm:$0xff]  ;;  %v339_v54 = vld [vmem:[#allocation2 + $0x60] sm:$0xff]  ;;  %s1835_s10 = ssub.f32 %s1831_s8, %s1834_s9 }
  0x4a   : > { %289 = vst.msk [vmem:[#allocation2 + $0x90] sm:$0xff] %vm262_vm0, %v281_v11  ;;  %290 = vst.msk [vmem:[#allocation2 + $0x98] sm:$0xff] %vm262_vm0, %v282_v12  ;;  %v318_v42 = vmul.f32 %v2758_v28, %v2704_v13  ;;  %v340_v55 = vld [vmem:[#allocation2 + $0x68] sm:$0xff]  ;;  %v341_v56 = vld [vmem:[#allocation2 + $0x70] sm:$0xff] }
  0x4b   : > { %291 = vst.msk [vmem:[#allocation2 + $0xa0] sm:$0xff] %vm262_vm0, %v283_v16  ;;  %292 = vst.msk [vmem:[#allocation2 + $0xa8] sm:$0xff] %vm262_vm0, %v284_v17  ;;  %v342_v57 = vld [vmem:[#allocation2 + $0x78] sm:$0xff]  ;;  %v351_v6 = vld [vmem:[#allocation2 + $0xc0] sm:$0xff]  ;;  %s1836_s11 = smul.f32 0.01, %s1835_s10 }
  0x4c   : > { %293 = vst.msk [vmem:[#allocation2 + $0xb0] sm:$0xff] %vm262_vm0, %v285_v18  ;;  %294 = vst.msk [vmem:[#allocation2 + $0xb8] sm:$0xff] %vm262_vm0, %v286_v22  ;;  %v327_v41 = vld [vmem:[#allocation2] sm:$0xff]  ;;  %v328_v43 = vld [vmem:[#allocation2 + $0x8] sm:$0xff]  ;;  %s1838_s13 = smul.f32 0.03, %s1835_s10 }
  0x4d   : > { %304 = vst.msk [vmem:[#allocation2 + $0xc8] sm:$0xff] %vm262_vm0, %v296_v24  ;;  %319 = vst.msk [vmem:[#allocation2 + $0x100] sm:$0xff] %vm262_vm0, %v311_v25  ;;  %2271 = vmatprep.mubr.msk.f32.mxu0 %vm262_vm0, %v327_v41  ;;  %v329_v44 = vld [vmem:[#allocation2 + $0x10] sm:$0xff]  ;;  %v330_v45 = vld [vmem:[#allocation2 + $0x18] sm:$0xff]  ;;  %s1837_s17 = smul.f32 %s1836_s11, %s1836_s11 }
  0x4e   : > { %305 = vst.msk [vmem:[#allocation2 + $0xd0] sm:$0xff] %vm262_vm0, %v297_v29  ;;  %306 = vst.msk [vmem:[#allocation2 + $0xd8] sm:$0xff] %vm262_vm0, %v298_v30  ;;  %2272 = vmatmul.mubr.msk.f32.vlgmr.msra.gmra.mxu0 %vm262_vm0, %v328_v43  ;;  %v331_v46 = vld [vmem:[#allocation2 + $0x20] sm:$0xff]  ;;  %v332_v47 = vld [vmem:[#allocation2 + $0x28] sm:$0xff]  ;;  %s1839_s18 = smul.f32 %s1838_s13, %s1838_s13 }
  0x4f   : > { %307 = vst.msk [vmem:[#allocation2 + $0xe0] sm:$0xff] %vm262_vm0, %v299_v31  ;;  %320 = vst.msk [vmem:[#allocation2 + $0x108] sm:$0xff] %vm262_vm0, %v312_v32  ;;  %2274 = vmatprep.mubr.msk.f32.mxu0 %vm262_vm0, %v329_v44  ;;  %v333_v48 = vld [vmem:[#allocation2 + $0x30] sm:$0xff]  ;;  %v343_v58 = vld [vmem:[#allocation2 + $0x80] sm:$0xff] }
  0x50   : > { %308 = vst.msk [vmem:[#allocation2 + $0xe8] sm:$0xff] %vm262_vm0, %v300_v33  ;;  %309 = vst.msk [vmem:[#allocation2 + $0xf0] sm:$0xff] %vm262_vm0, %v301_v34  ;;  %v334_v49 = vld [vmem:[#allocation2 + $0x38] sm:$0xff]  ;;  %v344_v59 = vld [vmem:[#allocation2 + $0x88] sm:$0xff] }
  0x51   : > { %310 = vst.msk [vmem:[#allocation2 + $0xf8] sm:$0xff] %vm262_vm0, %v302_v35  ;;  %321 = vst.msk [vmem:[#allocation2 + $0x110] sm:$0xff] %vm262_vm0, %v313_v36  ;;  %v345_v60 = vld [vmem:[#allocation2 + $0x90] sm:$0xff]  ;;  %v346_v61 = vld [vmem:[#allocation2 + $0x98] sm:$0xff] }
  0x52   : > { %322 = vst.msk [vmem:[#allocation2 + $0x118] sm:$0xff] %vm262_vm0, %v314_v37  ;;  %323 = vst.msk [vmem:[#allocation2 + $0x120] sm:$0xff] %vm262_vm0, %v315_v38  ;;  %2275 = vmatmul.mubr.msk.f32.gmra.mxu0 %vm262_vm0, %v330_v45  ;;  %v347_v62 = vld [vmem:[#allocation2 + $0xa0] sm:$0xff]  ;;  %v348_v63 = vld [vmem:[#allocation2 + $0xa8] sm:$0xff] }
  0x53   : > { %324 = vst.msk [vmem:[#allocation2 + $0x128] sm:$0xff] %vm262_vm0, %v316_v39  ;;  %325 = vst.msk [vmem:[#allocation2 + $0x130] sm:$0xff] %vm262_vm0, %v317_v40  ;;  %2277 = vmatprep.mubr.msk.f32.mxu0 %vm262_vm0, %v331_v46  ;;  %v349_v0 = vld [vmem:[#allocation2 + $0xb0] sm:$0xff]  ;;  %v350_v1 = vld [vmem:[#allocation2 + $0xb8] sm:$0xff] }
  0x54   : > { %326 = vst.msk [vmem:[#allocation2 + $0x138] sm:$0xff] %vm262_vm0, %v318_v42  ;;  %v352_v10 = vld [vmem:[#allocation2 + $0xc8] sm:$0xff]  ;;  %v359_v23 = vld [vmem:[#allocation2 + $0x100] sm:$0xff] }
  0x55   : > { %v353_v11 = vld [vmem:[#allocation2 + $0xd0] sm:$0xff]  ;;  %v354_v12 = vld [vmem:[#allocation2 + $0xd8] sm:$0xff]  ;;  %v1395_v34 = vld [vmem:[%s3076_s4 + $0x8] sm:$0xff] }
  0x56   : > { %2278 = vmatmul.mubr.msk.f32.gmra.mxu0 %vm262_vm0, %v332_v47  ;;  %v355_v16 = vld [vmem:[#allocation2 + $0xe0] sm:$0xff]  ;;  %v360_v24 = vld [vmem:[#allocation2 + $0x108] sm:$0xff]  ;;  %2331 = vmatprep.subr.mxu1 %v1395_v34 }
  0x57   : > { %2280 = vmatprep.mubr.msk.f32.mxu0 %vm262_vm0, %v333_v48  ;;  %v356_v17 = vld [vmem:[#allocation2 + $0xe8] sm:$0xff]  ;;  %v357_v18 = vld [vmem:[#allocation2 + $0xf0] sm:$0xff]  ;;  %v1394_v36 = vld [vmem:[%s3076_s4] sm:$0xff]  ;;  %2332 = vmatpush3.msra.mxu1 %v1395_v34 }
  0x58   : > { %v358_v22 = vld [vmem:[#allocation2 + $0xf8] sm:$0xff]  ;;  %v361_v25 = vld [vmem:[#allocation2 + $0x110] sm:$0xff]  ;;  %2333 = vmatprep.subr.mxu1 %v1394_v36 }
  0x59   : > { %v362_v29 = vld [vmem:[#allocation2 + $0x118] sm:$0xff]  ;;  %v363_v30 = vld [vmem:[#allocation2 + $0x120] sm:$0xff]  ;;  %2334 = vmatpush3.msra.mxu1 %v1394_v36 }
  0x5a   : > { %2281 = vmatmul.mubr.msk.f32.gmra.mxu0 %vm262_vm0, %v334_v49  ;;  %v364_v31 = vld [vmem:[#allocation2 + $0x128] sm:$0xff]  ;;  %v365_v32 = vld [vmem:[#allocation2 + $0x130] sm:$0xff] }
  0x5b   : > { %2283 = vmatprep.mubr.msk.f32.mxu0 %vm262_vm0, %v335_v50  ;;  %v366_v33 = vld [vmem:[#allocation2 + $0x138] sm:$0xff] }
  0x5e   : > { %2284 = vmatmul.mubr.msk.f32.gmra.mxu0 %vm262_vm0, %v336_v51 }
  0x5f   : > { %2286 = vmatprep.mubr.msk.f32.mxu0 %vm262_vm0, %v337_v52 }
  0x62   : > { %2287 = vmatmul.mubr.msk.f32.gmra.mxu0 %vm262_vm0, %v338_v53 }
  0x63   : > { %2289 = vmatprep.mubr.msk.f32.mxu0 %vm262_vm0, %v339_v54 }
  0x66   : > { %2290 = vmatmul.mubr.msk.f32.gmra.mxu0 %vm262_vm0, %v340_v55 }
  0x67   : > { %2292 = vmatprep.mubr.msk.f32.mxu0 %vm262_vm0, %v341_v56 }
  0x6a   : > { %2293 = vmatmul.mubr.msk.f32.gmra.mxu0 %vm262_vm0, %v342_v57 }
  0x6b   : > { %2295 = vmatprep.mubr.msk.f32.mxu0 %vm262_vm0, %v343_v58 }
  0x6e   : > { %2296 = vmatmul.mubr.msk.f32.gmra.mxu0 %vm262_vm0, %v344_v59 }
  0x6f   : > { %2298 = vmatprep.mubr.msk.f32.mxu0 %vm262_vm0, %v345_v60 }
  0x72   : > { %2299 = vmatmul.mubr.msk.f32.gmra.mxu0 %vm262_vm0, %v346_v61 }
  0x73   : > { %2301 = vmatprep.mubr.msk.f32.mxu0 %vm262_vm0, %v347_v62 }
  0x76   : > { %2302 = vmatmul.mubr.msk.f32.gmra.mxu0 %vm262_vm0, %v348_v63 }
  0x77   : > { %2304 = vmatprep.mubr.msk.f32.mxu0 %vm262_vm0, %v349_v0 }
  0x7a   : > { %2305 = vmatmul.mubr.msk.f32.gmra.mxu0 %vm262_vm0, %v350_v1 }
  0x7b   : > { %2307 = vmatprep.mubr.msk.f32.mxu0 %vm262_vm0, %v351_v6 }
  0x7e   : > { %2308 = vmatmul.mubr.msk.f32.gmra.mxu0 %vm262_vm0, %v352_v10 }
  0x7f   : > { %2310 = vmatprep.mubr.msk.f32.mxu0 %vm262_vm0, %v353_v11 }
  0x82   : > { %2311 = vmatmul.mubr.msk.f32.gmra.mxu0 %vm262_vm0, %v354_v12 }
  0x83   : > { %2313 = vmatprep.mubr.msk.f32.mxu0 %vm262_vm0, %v355_v16 }
  0x86   : > { %2314 = vmatmul.mubr.msk.f32.gmra.mxu0 %vm262_vm0, %v356_v17 }
  0x87   : > { %2316 = vmatprep.mubr.msk.f32.mxu0 %vm262_vm0, %v357_v18 }
  0x8a   : > { %2317 = vmatmul.mubr.msk.f32.gmra.mxu0 %vm262_vm0, %v358_v22 }
  0x8b   : > { %2319 = vmatprep.mubr.msk.f32.mxu0 %vm262_vm0, %v359_v23 }
  0x8e   : > { %2320 = vmatmul.mubr.msk.f32.gmra.mxu0 %vm262_vm0, %v360_v24 }
  0x8f   : > { %2322 = vmatprep.mubr.msk.f32.mxu0 %vm262_vm0, %v361_v25 }
  0x92   : > { %2323 = vmatmul.mubr.msk.f32.gmra.mxu0 %vm262_vm0, %v362_v29 }
  0x93   : > { %2325 = vmatprep.mubr.msk.f32.mxu0 %vm262_vm0, %v363_v30 }
  0x96   : > { %2326 = vmatmul.mubr.msk.f32.gmra.mxu0 %vm262_vm0, %v364_v31 }
  0x97   : > { %2328 = vmatprep.mubr.msk.f32.mxu0 %vm262_vm0, %v365_v32 }
  0x9a   : > { %2329 = vmatmul.mubr.msk.f32.gmra.mxu0 %vm262_vm0, %v366_v33 }
 0x10e   : > { %v2273_v35 = vpop.f32.mrf.mxu0 }
 0x110   : > { %v555_v37 = vpop.f32.mrf.mxu0 }
 0x111   : > { %754 = vxpose.xlu0.b32.start [1/2] (short) (narrow) %v555_v37, 16 }
 0x112   : > { %v2276_v38 = vpop.f32.mrf.mxu0 }
 0x114   : > { %v565_v39 = vpop.f32.mrf.mxu0 }
 0x115   : > { %755 = vxpose.xlu0.b32.end [2/2] (short) (narrow) %v2273_v35, 16  ;;  %786 = vxpose.xlu1.b32.start [1/2] (short) (narrow) %v565_v39, 16 }
 0x116   : > { %v2279_v40 = vpop.f32.mrf.mxu0 }
 0x118   : > { %v575_v41 = vpop.f32.mrf.mxu0 }
 0x119   : > { %787 = vxpose.xlu1.b32.end [2/2] (short) (narrow) %v2276_v38, 16  ;;  %818 = vxpose.xlu0.b32.start [1/2] (short) (narrow) %v575_v41, 16 }
 0x11a   : > { %v2282_v42 = vpop.f32.mrf.mxu0 }
 0x11c   : > { %v585_v43 = vpop.f32.mrf.mxu0 }
 0x11d   : > { %819 = vxpose.xlu0.b32.end [2/2] (short) (narrow) %v2279_v40, 16  ;;  %850 = vxpose.xlu1.b32.start [1/2] (short) (narrow) %v585_v43, 16 }
 0x11e   : > { %v2285_v44 = vpop.f32.mrf.mxu0 }
 0x120   : > { %v595_v45 = vpop.f32.mrf.mxu0 }
 0x121   : > { %851 = vxpose.xlu1.b32.end [2/2] (short) (narrow) %v2282_v42, 16  ;;  %882 = vxpose.xlu0.b32.start [1/2] (short) (narrow) %v595_v45, 16 }
 0x122   : > { %v2288_v46 = vpop.f32.mrf.mxu0 }
 0x124   : > { %v605_v47 = vpop.f32.mrf.mxu0 }
 0x125   : > { %883 = vxpose.xlu0.b32.end [2/2] (short) (narrow) %v2285_v44, 16  ;;  %914 = vxpose.xlu1.b32.start [1/2] (short) (narrow) %v605_v47, 16 }
 0x126   : > { %v2291_v48 = vpop.f32.mrf.mxu0 }
 0x128   : > { %v615_v49 = vpop.f32.mrf.mxu0 }
 0x129   : > { %915 = vxpose.xlu1.b32.end [2/2] (short) (narrow) %v2288_v46, 16  ;;  %946 = vxpose.xlu0.b32.start [1/2] (short) (narrow) %v615_v49, 16 }
 0x12a   : > { %v2294_v50 = vpop.f32.mrf.mxu0 }
 0x12c   : > { %v625_v51 = vpop.f32.mrf.mxu0 }
 0x12d   : > { %947 = vxpose.xlu0.b32.end [2/2] (short) (narrow) %v2291_v48, 16  ;;  %978 = vxpose.xlu1.b32.start [1/2] (short) (narrow) %v625_v51, 16 }
 0x12e   : > { %v2297_v52 = vpop.f32.mrf.mxu0 }
 0x130   : > { %v635_v53 = vpop.f32.mrf.mxu0 }
 0x131   : > { %979 = vxpose.xlu1.b32.end [2/2] (short) (narrow) %v2294_v50, 16  ;;  %1010 = vxpose.xlu0.b32.start [1/2] (short) (narrow) %v635_v53, 16 }
 0x132   : > { %v2300_v54 = vpop.f32.mrf.mxu0 }
 0x134   : > { %v645_v55 = vpop.f32.mrf.mxu0 }
 0x135   : > { %1011 = vxpose.xlu0.b32.end [2/2] (short) (narrow) %v2297_v52, 16  ;;  %1042 = vxpose.xlu1.b32.start [1/2] (short) (narrow) %v645_v55, 16 }
 0x136   : > { %v2303_v56 = vpop.f32.mrf.mxu0 }
 0x138   : > { %v655_v57 = vpop.f32.mrf.mxu0 }
 0x139   : > { %1043 = vxpose.xlu1.b32.end [2/2] (short) (narrow) %v2300_v54, 16  ;;  %1074 = vxpose.xlu0.b32.start [1/2] (short) (narrow) %v655_v57, 16 }
 0x13a   : > { %v2306_v58 = vpop.f32.mrf.mxu0 }
 0x13c   : > { %v665_v59 = vpop.f32.mrf.mxu0 }
 0x13d   : > { %1075 = vxpose.xlu0.b32.end [2/2] (short) (narrow) %v2303_v56, 16  ;;  %1106 = vxpose.xlu1.b32.start [1/2] (short) (narrow) %v665_v59, 16 }
 0x13e   : > { %v2309_v60 = vpop.f32.mrf.mxu0 }
 0x140   : > { %v675_v61 = vpop.f32.mrf.mxu0 }
 0x141   : > { %1107 = vxpose.xlu1.b32.end [2/2] (short) (narrow) %v2306_v58, 16  ;;  %1138 = vxpose.xlu0.b32.start [1/2] (short) (narrow) %v675_v61, 16 }
 0x142   : > { %v2312_v62 = vpop.f32.mrf.mxu0 }
 0x144   : > { %v685_v63 = vpop.f32.mrf.mxu0 }
 0x145   : > { %1139 = vxpose.xlu0.b32.end [2/2] (short) (narrow) %v2309_v60, 16  ;;  %1170 = vxpose.xlu1.b32.start [1/2] (short) (narrow) %v685_v63, 16 }
 0x146   : > { %v2315_v0 = vpop.f32.mrf.mxu0 }
 0x148   : > { %v695_v1 = vpop.f32.mrf.mxu0 }
 0x149   : > { %1171 = vxpose.xlu1.b32.end [2/2] (short) (narrow) %v2312_v62, 16  ;;  %1202 = vxpose.xlu0.b32.start [1/2] (short) (narrow) %v695_v1, 16 }
 0x14a   : > { %v2318_v6 = vpop.f32.mrf.mxu0 }
 0x14c   : > { %v705_v10 = vpop.f32.mrf.mxu0 }
 0x14d   : > { %1203 = vxpose.xlu0.b32.end [2/2] (short) (narrow) %v2315_v0, 16  ;;  %1234 = vxpose.xlu1.b32.start [1/2] (short) (narrow) %v705_v10, 16 }
 0x14e   : > { %v2321_v11 = vpop.f32.mrf.mxu0 }
 0x150   : > { %v715_v12 = vpop.f32.mrf.mxu0 }
 0x151   : > { %1235 = vxpose.xlu1.b32.end [2/2] (short) (narrow) %v2318_v6, 16  ;;  %1266 = vxpose.xlu0.b32.start [1/2] (short) (narrow) %v715_v12, 16  ;;  %v1939_v12 = vsub.f32 %v2672_v3, %v2710_v15 }
 0x152   : > { %v2324_v16 = vpop.f32.mrf.mxu0 }
 0x154   : > { %v725_v17 = vpop.f32.mrf.mxu0 }
 0x155   : > { %1267 = vxpose.xlu0.b32.end [2/2] (short) (narrow) %v2321_v11, 16  ;;  %1298 = vxpose.xlu1.b32.start [1/2] (short) (narrow) %v725_v17, 16  ;;  %v1938_v11 = vsub.f32 %v2668_v2, %v2707_v14  ;;  %v1942_v2 = vsub.f32 %v2686_v7, %v2732_v21  ;;  %v1945_v7 = vsub.f32 %v2704_v13, %v2758_v28 }
 0x156   : > { %v2327_v18 = vpop.f32.mrf.mxu0 }
 0x157   : > { %v1970_v17 = vmul.f32 %v1938_v11, %v1938_v11 }
 0x158   : > { %v735_v22 = vpop.f32.mrf.mxu0 }
 0x159   : > { %1299 = vxpose.xlu1.b32.end [2/2] (short) (narrow) %v2324_v16, 16  ;;  %1330 = vxpose.xlu0.b32.start [1/2] (short) (narrow) %v735_v22, 16  ;;  %v1940_v16 = vsub.f32 %v2674_v4, %v2726_v19  ;;  %v1941_v22 = vsub.f32 %v2676_v5, %v2729_v20  ;;  %v1943_v4 = vsub.f32 %v2688_v8, %v2752_v26 }
 0x15a   : > { %v2330_v23 = vpop.f32.mrf.mxu0  ;;  %v1974_v19 = vmul.f32 %v1942_v2, %v1942_v2  ;;  %v1944_v20 = vsub.f32 %v2690_v9, %v2755_v27 }
 0x15b   : > { %v1973_v14 = vmul.f32 %v1941_v22, %v1941_v22 }
 0x15c   : > { %v745_v24 = vpop.f32.mrf.mxu0  ;;  %v1976_v21 = vmul.f32 %v1944_v20, %v1944_v20 }
 0x15d   : > { %1331 = vxpose.xlu0.b32.end [2/2] (short) (narrow) %v2327_v18, 16  ;;  %1362 = vxpose.xlu1.b32.start [1/2] (short) (narrow) %v745_v24, 16  ;;  %v1971_v18 = vmul.f32 %v1939_v12, %v1939_v12  ;;  %v1978_v24 = vsel %vm262_vm0, %v1970_v17, 0.0 }
 0x15e   : > { %v1989_v8 = vsel %vm262_vm0, %v1976_v21, 0.0 }
 0x161   : > { %1363 = vxpose.xlu1.b32.end [2/2] (short) (narrow) %v2330_v23, 16  ;;  %v1972_v23 = vmul.f32 %v1940_v16, %v1940_v16 }
 0x163   : > { %v1981_v3 = vsel %vm262_vm0, %v1972_v23, 0.0 }
 0x18d   : > { %v770_v25 = vpop.trf.xlu0 }
 0x18e   : > { %2335 = vmatprep.mubr.msk.f32.mxu1 %vm262_vm0, %v770_v25  ;;  %v1979_v25 = vsel %vm262_vm0, %v1971_v18, 0.0 }
 0x191   : > { %v771_v29 = vpop.trf.xlu0  ;;  %v802_v30 = vpop.trf.xlu1 }
 0x192   : > { %2336 = vmatmul.mubr.msk.f32.vlgmr.msra.gmra.mxu1 %vm262_vm0, %v771_v29  ;;  %v1980_v29 = vadd.f32 %v1979_v25, %v1978_v24 }
 0x193   : > { %2338 = vmatprep.mubr.msk.f32.mxu1 %vm262_vm0, %v802_v30  ;;  %v1983_v30 = vsel %vm262_vm0, %v1973_v14, 0.0 }
 0x194   : > { %v1982_v15 = vadd.f32 %v1981_v3, %v1980_v29 }
 0x195   : > { %v803_v31 = vpop.trf.xlu1  ;;  %v834_v32 = vpop.trf.xlu0 }
 0x196   : > { %2339 = vmatmul.mubr.msk.f32.gmra.mxu1 %vm262_vm0, %v803_v31  ;;  %v1984_v5 = vadd.f32 %v1983_v30, %v1982_v15  ;;  %v1975_v31 = vmul.f32 %v1943_v4, %v1943_v4 }
 0x197   : > { %2341 = vmatprep.mubr.msk.f32.mxu1 %vm262_vm0, %v834_v32  ;;  %v1985_v32 = vsel %vm262_vm0, %v1974_v19, 0.0 }
 0x199   : > { %v835_v33 = vpop.trf.xlu0  ;;  %v866_v34 = vpop.trf.xlu1 }
 0x19a   : > { %2342 = vmatmul.mubr.msk.f32.gmra.mxu1 %vm262_vm0, %v835_v33  ;;  %v1986_v33 = vadd.f32 %v1985_v32, %v1984_v5 }
 0x19b   : > { %2344 = vmatprep.mubr.msk.f32.mxu1 %vm262_vm0, %v866_v34  ;;  %v1987_v34 = vsel %vm262_vm0, %v1975_v31, 0.0 }
 0x19d   : > { %v867_v35 = vpop.trf.xlu1  ;;  %v898_v36 = vpop.trf.xlu0 }
 0x19e   : > { %2345 = vmatmul.mubr.msk.f32.gmra.mxu1 %vm262_vm0, %v867_v35  ;;  %v1988_v35 = vadd.f32 %v1987_v34, %v1986_v33 }
 0x19f   : > { %2347 = vmatprep.mubr.msk.f32.mxu1 %vm262_vm0, %v898_v36  ;;  %v1977_v36 = vmul.f32 %v1945_v7, %v1945_v7 }
 0x1a0   : > { %v1990_v26 = vadd.f32 %v1989_v8, %v1988_v35 }
 0x1a1   : > { %v899_v37 = vpop.trf.xlu0  ;;  %v930_v38 = vpop.trf.xlu1 }
 0x1a2   : > { %2348 = vmatmul.mubr.msk.f32.gmra.mxu1 %vm262_vm0, %v899_v37  ;;  %v1991_v37 = vsel %vm262_vm0, %v1977_v36, 0.0 }
 0x1a3   : > { %2350 = vmatprep.mubr.msk.f32.mxu1 %vm262_vm0, %v930_v38  ;;  %v1992_v38 = vadd.f32 %v1991_v37, %v1990_v26 }
 0x1a5   : > { %v931_v39 = vpop.trf.xlu1  ;;  %v962_v40 = vpop.trf.xlu0  ;;  %1993 = vadd.xlane.f32.xlu1 %v1992_v38 }
 0x1a6   : > { %2351 = vmatmul.mubr.msk.f32.gmra.mxu1 %vm262_vm0, %v931_v39 }
 0x1a7   : > { %2353 = vmatprep.mubr.msk.f32.mxu1 %vm262_vm0, %v962_v40 }
 0x1a9   : > { %v963_v41 = vpop.trf.xlu0  ;;  %v994_v42 = vpop.trf.xlu1 }
 0x1aa   : > { %2354 = vmatmul.mubr.msk.f32.gmra.mxu1 %vm262_vm0, %v963_v41 }
 0x1ab   : > { %2356 = vmatprep.mubr.msk.f32.mxu1 %vm262_vm0, %v994_v42 }
 0x1ad   : > { %v995_v43 = vpop.trf.xlu1  ;;  %v1026_v44 = vpop.trf.xlu0 }
 0x1ae   : > { %2357 = vmatmul.mubr.msk.f32.gmra.mxu1 %vm262_vm0, %v995_v43 }
 0x1af   : > { %2359 = vmatprep.mubr.msk.f32.mxu1 %vm262_vm0, %v1026_v44 }
 0x1b1   : > { %v1027_v45 = vpop.trf.xlu0  ;;  %v1058_v46 = vpop.trf.xlu1 }
 0x1b2   : > { %2360 = vmatmul.mubr.msk.f32.gmra.mxu1 %vm262_vm0, %v1027_v45 }
 0x1b3   : > { %2362 = vmatprep.mubr.msk.f32.mxu1 %vm262_vm0, %v1058_v46 }
 0x1b5   : > { %v1059_v47 = vpop.trf.xlu1  ;;  %v1090_v48 = vpop.trf.xlu0 }
 0x1b6   : > { %2363 = vmatmul.mubr.msk.f32.gmra.mxu1 %vm262_vm0, %v1059_v47 }
 0x1b7   : > { %2365 = vmatprep.mubr.msk.f32.mxu1 %vm262_vm0, %v1090_v48 }
 0x1b9   : > { %v1091_v49 = vpop.trf.xlu0  ;;  %v1122_v50 = vpop.trf.xlu1 }
 0x1ba   : > { %2366 = vmatmul.mubr.msk.f32.gmra.mxu1 %vm262_vm0, %v1091_v49 }
 0x1bb   : > { %2368 = vmatprep.mubr.msk.f32.mxu1 %vm262_vm0, %v1122_v50 }
 0x1bd   : > { %v1123_v51 = vpop.trf.xlu1  ;;  %v1154_v52 = vpop.trf.xlu0 }
 0x1be   : > { %2369 = vmatmul.mubr.msk.f32.gmra.mxu1 %vm262_vm0, %v1123_v51 }
 0x1bf   : > { %2371 = vmatprep.mubr.msk.f32.mxu1 %vm262_vm0, %v1154_v52 }
 0x1c1   : > { %v1155_v53 = vpop.trf.xlu0  ;;  %v1186_v54 = vpop.trf.xlu1 }
 0x1c2   : > { %2372 = vmatmul.mubr.msk.f32.gmra.mxu1 %vm262_vm0, %v1155_v53 }
 0x1c3   : > { %2374 = vmatprep.mubr.msk.f32.mxu1 %vm262_vm0, %v1186_v54 }
 0x1c5   : > { %v1187_v55 = vpop.trf.xlu1  ;;  %v1218_v56 = vpop.trf.xlu0 }
 0x1c6   : > { %2375 = vmatmul.mubr.msk.f32.gmra.mxu1 %vm262_vm0, %v1187_v55 }
 0x1c7   : > { %2377 = vmatprep.mubr.msk.f32.mxu1 %vm262_vm0, %v1218_v56 }
 0x1c9   : > { %v1219_v57 = vpop.trf.xlu0  ;;  %v1250_v58 = vpop.trf.xlu1 }
 0x1ca   : > { %2378 = vmatmul.mubr.msk.f32.gmra.mxu1 %vm262_vm0, %v1219_v57 }
 0x1cb   : > { %2380 = vmatprep.mubr.msk.f32.mxu1 %vm262_vm0, %v1250_v58 }
 0x1cd   : > { %v1251_v59 = vpop.trf.xlu1  ;;  %v1282_v60 = vpop.trf.xlu0 }
 0x1ce   : > { %2381 = vmatmul.mubr.msk.f32.gmra.mxu1 %vm262_vm0, %v1251_v59  ;;  %v2952_v59 = vstv %s1837_s17 }
 0x1cf   : > { %2383 = vmatprep.mubr.msk.f32.mxu1 %vm262_vm0, %v1282_v60 }
 0x1d1   : > { %v1283_v61 = vpop.trf.xlu0  ;;  %v1314_v62 = vpop.trf.xlu1 }
 0x1d2   : > { %2384 = vmatmul.mubr.msk.f32.gmra.mxu1 %vm262_vm0, %v1283_v61 }
 0x1d3   : > { %2386 = vmatprep.mubr.msk.f32.mxu1 %vm262_vm0, %v1314_v62 }
 0x1d5   : > { %v1315_v63 = vpop.trf.xlu1  ;;  %v1346_v0 = vpop.trf.xlu0 }
 0x1d6   : > { %2387 = vmatmul.mubr.msk.f32.gmra.mxu1 %vm262_vm0, %v1315_v63 }
 0x1d7   : > { %2389 = vmatprep.mubr.msk.f32.mxu1 %vm262_vm0, %v1346_v0  ;;  %v2960_v0 = vstv %s1839_s18 }
 0x1d9   : > { %v1347_v1 = vpop.trf.xlu0  ;;  %v1378_v6 = vpop.trf.xlu1 }
 0x1da   : > { %2390 = vmatmul.mubr.msk.f32.gmra.mxu1 %vm262_vm0, %v1347_v1 }
 0x1db   : > { %2392 = vmatprep.mubr.msk.f32.mxu1 %vm262_vm0, %v1378_v6 }
 0x1dd   : > { %v1379_v10 = vpop.trf.xlu1 }
 0x1de   : > { %2393 = vmatmul.mubr.msk.f32.gmra.mxu1 %vm262_vm0, %v1379_v10 }
 0x252   : > { %v2337_v9 = vpop.f32.mrf.mxu1 }
 0x253   : > { %v1782_v61 = vmul.f32 %v2337_v9, %v2337_v9 }
 0x254   : > { %v2922_v27 = vpop.f32.mrf.mxu1 }
 0x255   : > { %v1781_v62 = vmul.f32 %v2922_v27, %v2922_v27 }
 0x256   : > { %v2924_v39 = vpop.f32.mrf.mxu1 }
 0x257   : > { %v1784_v63 = vmul.f32 %v2924_v39, %v2924_v39 }
 0x258   : > { %v2926_v40 = vpop.f32.mrf.mxu1 }
 0x259   : > { %v1783_v16 = vmul.f32 %v2926_v40, %v2926_v40 }
 0x25a   : > { %v2928_v13 = vpop.f32.mrf.mxu1 }
 0x25b   : > { %v1786_v17 = vmul.f32 %v2928_v13, %v2928_v13 }
 0x25c   : > { %v2930_v28 = vpop.f32.mrf.mxu1 }
 0x25d   : > { %v1785_v23 = vmul.f32 %v2930_v28, %v2930_v28 }
 0x25e   : > { %v2932_v41 = vpop.f32.mrf.mxu1 }
 0x25f   : > { %v1788_v24 = vmul.f32 %v2932_v41, %v2932_v41 }
 0x260   : > { %v2934_v42 = vpop.f32.mrf.mxu1 }
 0x261   : > { %v2978_v14 = vmul.f32 %v2934_v42, %v2934_v42 }
 0x262   : > { %v2349_v43 = vpop.f32.mrf.mxu1 }
 0x263   : > { %v1790_v58 = vmul.f32 %v2349_v43, %v2349_v43  ;;  %v2974_v25 = vmul.f32 %v2349_v43, %v2337_v9 }
 0x264   : > { %v1622_v44 = vpop.f32.mrf.mxu1 }
 0x265   : > { %v1789_v1 = vmul.f32 %v1622_v44, %v1622_v44  ;;  %v1899_v29 = vadd.f32 %v1790_v58, %v1782_v61  ;;  %v1874_v34 = vmul.f32 2.0, %v2974_v25  ;;  %v2984_v36 = vmul.f32 %v1622_v44, %v2922_v27 }
 0x266   : > { %v2352_v45 = vpop.f32.mrf.mxu1 }
 0x267   : > { %v1792_v6 = vmul.f32 %v2352_v45, %v2352_v45  ;;  %v1898_v19 = vadd.f32 %v1789_v1, %v1781_v62  ;;  %v1907_v35 = vadd.f32 %v1899_v29, %v2952_v59  ;;  %v2987_v8 = vmul.f32 %v2352_v45, %v2924_v39 }
 0x268   : > { %v2936_v46 = vpop.f32.mrf.mxu1 }
 0x269   : > { %v1791_v10 = vmul.f32 %v2936_v46, %v2936_v46  ;;  %v1901_v30 = vadd.f32 %v1792_v6, %v1784_v63 }
 0x26a   : > { %v2938_v47 = vpop.f32.mrf.mxu1 }
 0x26b   : > { %v1794_v11 = vmul.f32 %v2938_v47, %v2938_v47  ;;  %v1900_v5 = vadd.f32 %v1791_v10, %v1783_v16 }
 0x26c   : > { %v2940_v48 = vpop.f32.mrf.mxu1 }
 0x26d   : > { %v1903_v20 = vadd.f32 %v1794_v11, %v1786_v17  ;;  %v1908_v27 = vadd.f32 %v1900_v5, %v2952_v59 }
 0x26e   : > { %v2942_v49 = vpop.f32.mrf.mxu1 }
 0x26f   : > { %v1911_v39 = vadd.f32 %v1903_v20, %v2952_v59 }
 0x270   : > { %v2944_v50 = vpop.f32.mrf.mxu1 }
 0x271   : > { %v1795_v29 = vmul.f32 %v2944_v50, %v2944_v50 }
 0x272   : > { %v2361_v51 = vpop.f32.mrf.mxu1 }
 0x273   : > { %v1806_v18 = vsub.f32 %v2361_v51, %v1782_v61  ;;  %v1906_v51 = vadd.f32 %v1898_v19, %v2952_v59 }
 0x274   : > { %v1662_v52 = vpop.f32.mrf.mxu1 }
 0x275   : > { %v1805_v3 = vsub.f32 %v1662_v52, %v1781_v62  ;;  %v1909_v52 = vadd.f32 %v1901_v30, %v2952_v59 }
 0x276   : > { %v2364_v53 = vpop.f32.mrf.mxu1 }
 0x277   : > { %v1808_v32 = vsub.f32 %v2364_v53, %v1784_v63  ;;  %v1793_v53 = vmul.f32 %v2940_v48, %v2940_v48 }
 0x278   : > { %v1672_v54 = vpop.f32.mrf.mxu1 }
 0x279   : > { %v1807_v37 = vsub.f32 %v1672_v54, %v1783_v16  ;;  %v1796_v54 = vmul.f32 %v2942_v49, %v2942_v49 }
 0x27a   : > { %v2946_v55 = vpop.f32.mrf.mxu1 }
 0x27b   : > { %v1810_v62 = vsub.f32 %v2946_v55, %v1786_v17 }
 0x27c   : > { %v2948_v56 = vpop.f32.mrf.mxu1 }
 0x27e   : > { %v2950_v57 = vpop.f32.mrf.mxu1 }
 0x280   : > { %v2954_v60 = vpop.f32.mrf.mxu1 }
 0x282   : > { %v2373_v12 = vpop.f32.mrf.mxu1 }
 0x283   : > { %v1814_v22 = vsub.f32 %v2373_v12, %v1790_v58 }
 0x284   : > { %v1702_v2 = vpop.f32.mrf.mxu1 }
 0x285   : > { %v1858_v15 = vadd.f32 %v1814_v22, %v1806_v18  ;;  %v1813_v4 = vsub.f32 %v1702_v2, %v1789_v1  ;;  %v1902_v22 = vadd.f32 %v1793_v53, %v1785_v23 }
 0x286   : > { %v2376_v31 = vpop.f32.mrf.mxu1 }
 0x287   : > { %v1866_v33 = vadd.f32 %v1858_v15, %v2960_v0  ;;  %v1857_v7 = vadd.f32 %v1813_v4, %v1805_v3  ;;  %v1816_v21 = vsub.f32 %v2376_v31, %v1792_v6  ;;  %v1812_v15 = vsub.f32 %v2950_v57, %v1788_v24 }
 0x288   : > { %v1712_v26 = vpop.f32.mrf.mxu1  ;;  %v1873_v31 = vmul.f32 2.0, %v2984_v36  ;;  %v1910_v57 = vadd.f32 %v1902_v22, %v2952_v59  ;;  %v1803_v22 = vmul.f32 %v2944_v50, %v2934_v42 }
 0x289   : > { %v1865_v38 = vadd.f32 %v1857_v7, %v2960_v0  ;;  %v1860_v9 = vadd.f32 %v1816_v21, %v1808_v32  ;;  %v1815_v43 = vsub.f32 %v1712_v26, %v1791_v10  ;;  %v1915_v58 = vmul.f32 %v1907_v35, %v1866_v33 }
 0x28a   : > { %v2379_v61 = vpop.f32.mrf.mxu1  ;;  %v1809_v10 = vsub.f32 %v2948_v56, %v1785_v23  ;;  %v1811_v56 = vsub.f32 %v2954_v60, %v2978_v14  ;;  %v1904_v32 = vadd.f32 %v1795_v29, %v2978_v14  ;;  %v1883_v35 = vadd.f32 %v2952_v59, %v1874_v34 }
 0x28b   : > { %v1868_v44 = vadd.f32 %v1860_v9, %v2960_v0  ;;  %v1859_v45 = vadd.f32 %v1815_v43, %v1807_v37  ;;  %v1914_v63 = vmul.f32 %v1906_v51, %v1865_v38  ;;  %v1818_v1 = vsub.f32 %v2379_v61, %v1794_v11 }
 0x28c   : > { %v1722_v6 = vpop.f32.mrf.mxu1  ;;  %2442 = vrcp.f32 %v1915_v58  ;;  %v1905_v11 = vadd.f32 %v1796_v54, %v1788_v24  ;;  %v1799_v26 = vmul.f32 %v2936_v46, %v2926_v40  ;;  %v1876_v9 = vmul.f32 2.0, %v2987_v8 }
 0x28d   : > { %v1917_v12 = vmul.f32 %v1909_v52, %v1868_v44  ;;  %v1867_v16 = vadd.f32 %v1859_v45, %v2960_v0  ;;  %v1817_v18 = vsub.f32 %v1722_v6, %v1793_v53  ;;  %v1862_v2 = vadd.f32 %v1818_v1, %v1810_v62 }
 0x28e   : > { %v2382_v3 = vpop.f32.mrf.mxu1  ;;  %2444 = vrcp.f32 %v1914_v63  ;;  %v1913_v43 = vadd.f32 %v1905_v11, %v2952_v59  ;;  %v1882_v52 = vadd.f32 %v2952_v59, %v1873_v31  ;;  %v1802_v53 = vmul.f32 %v2938_v47, %v2928_v13 }
 0x28f   : > { %v1916_v4 = vmul.f32 %v1908_v27, %v1867_v16  ;;  %v1861_v55 = vadd.f32 %v1817_v18, %v1809_v10  ;;  %v1820_v17 = vsub.f32 %v2382_v3, %v1796_v54  ;;  %v1870_v19 = vadd.f32 %v1862_v2, %v2960_v0 }
 0x290   : > { %v1732_v30 = vpop.f32.mrf.mxu1  ;;  %2446 = vrcp.f32 %v1917_v12  ;;  %v1875_v27 = vmul.f32 2.0, %v1799_v26  ;;  %v1885_v54 = vadd.f32 %v2952_v59, %v1876_v9  ;;  %v1878_v63 = vmul.f32 2.0, %v1802_v53 }
 0x291   : > { %v1869_v23 = vadd.f32 %v1861_v55, %v2960_v0  ;;  %v1864_v5 = vadd.f32 %v1820_v17, %v1812_v15  ;;  %v1819_v20 = vsub.f32 %v1732_v30, %v1795_v29  ;;  %2448 = vrcp.f32 %v1916_v4 }
 0x292   : > { %v2385_v24 = vpop.f32.mrf.mxu1  ;;  %v1919_v33 = vmul.f32 %v1911_v39, %v1870_v19  ;;  %v1804_v1 = vmul.f32 %v2942_v49, %v2932_v41  ;;  %v1887_v55 = vadd.f32 %v2952_v59, %v1878_v63 }
 0x293   : > { %v1872_v60 = vadd.f32 %v1864_v5, %v2960_v0  ;;  %v1863_v7 = vadd.f32 %v1819_v20, %v1811_v56  ;;  %v1822_v21 = vsub.f32 %v2385_v24, %v2974_v25  ;;  %v1918_v37 = vmul.f32 %v1910_v57, %v1869_v23 }
 0x294   : > { %v1742_v38 = vpop.f32.mrf.mxu1  ;;  %v1912_v25 = vadd.f32 %v1904_v32, %v2952_v59  ;;  %2450 = vrcp.f32 %v1919_v33  ;;  %v1880_v42 = vmul.f32 2.0, %v1804_v1  ;;  %v1879_v20 = vmul.f32 2.0, %v1803_v22 }
 0x295   : > { %v1871_v14 = vadd.f32 %v1863_v7, %v2960_v0  ;;  %v1841_v51 = vmul.f32 2.0, %v1822_v21  ;;  %v1821_v34 = vsub.f32 %v1742_v38, %v2984_v36  ;;  %v1921_v40 = vmul.f32 %v1913_v43, %v1872_v60 }
 0x296   : > { %v2388_v58 = vpop.f32.mrf.mxu1  ;;  %2452 = vrcp.f32 %v1918_v37  ;;  %v1801_v36 = vmul.f32 %v2940_v48, %v2930_v28  ;;  %v1884_v48 = vadd.f32 %v2952_v59, %v1875_v27  ;;  %v1889_v9 = vadd.f32 %v2952_v59, %v1880_v42 }
 0x297   : > { %v1850_v46 = vadd.f32 %v2960_v0, %v1841_v51  ;;  %v1824_v61 = vsub.f32 %v2388_v58, %v2987_v8  ;;  %v1920_v39 = vmul.f32 %v1912_v25, %v1871_v14  ;;  %v1840_v44 = vmul.f32 2.0, %v1821_v34 }
 0x298   : > { %v1752_v45 = vpop.f32.mrf.mxu1  ;;  %2454 = vrcp.f32 %v1921_v40  ;;  %v1877_v17 = vmul.f32 2.0, %v1801_v36  ;;  %v1888_v58 = vadd.f32 %v2952_v59, %v1879_v20 }
 0x299   : > { %v1891_v62 = vmul.f32 %v1883_v35, %v1850_v46  ;;  %v1843_v13 = vmul.f32 2.0, %v1824_v61  ;;  %v1823_v47 = vsub.f32 %v1752_v45, %v1799_v26  ;;  %v1849_v6 = vadd.f32 %v2960_v0, %v1840_v44  ;;  %v2443_v10 = vpop.eup %2442 }
 0x29a   : > { %v2391_v8 = vpop.f32.mrf.mxu1  ;;  %2456 = vrcp.f32 %v1920_v39  ;;  %v1886_v35 = vadd.f32 %v2952_v59, %v1877_v17  ;;  %v2002_v17 = vlaneseq }
 0x29b   : > { %v1852_v12 = vadd.f32 %v2960_v0, %v1843_v13  ;;  %v1842_v16 = vmul.f32 2.0, %v1823_v47  ;;  %v1826_v18 = vsub.f32 %v2391_v8, %v1802_v53  ;;  %v1931_v29 = vmul.f32 %v2443_v10, %v1891_v62  ;;  %v2445_v28 = vpop.eup %2444 }
 0x29c   : > { %v1890_v2 = vmul.f32 %v1882_v52, %v1849_v6  ;;  %v1762_v3 = vpop.f32.mrf.mxu1 }
 0x29d   : > { %v1893_v41 = vmul.f32 %v1885_v54, %v1852_v12  ;;  %v1851_v49 = vadd.f32 %v2960_v0, %v1842_v16  ;;  %v1845_v15 = vmul.f32 2.0, %v1826_v18  ;;  %v2447_v4 = vpop.eup %2446  ;;  %v1825_v56 = vsub.f32 %v1762_v3, %v1801_v36 }
 0x29e   : > { %v1930_v11 = vmul.f32 %v2445_v28, %v1890_v2  ;;  %v2394_v19 = vpop.f32.mrf.mxu1  ;;  %v2449_v30 = vpop.eup %2448  ;;  %v1947_v31 = vsel %vm262_vm0, %v1931_v29, 0.0 }
 0x29f   : > { %v1892_v50 = vmul.f32 %v1884_v48, %v1851_v49  ;;  %v1854_v23 = vadd.f32 %v2960_v0, %v1845_v15  ;;  %v1828_v5 = vsub.f32 %v2394_v19, %v1804_v1  ;;  %v1844_v32 = vmul.f32 2.0, %v1825_v56 }
 0x2a0   : > { %v1946_v57 = vsel %vm262_vm0, %v1930_v11, 0.0  ;;  %v1772_v24 = vpop.f32.mrf.mxu1  ;;  %v1933_v60 = vmul.f32 %v2447_v4, %v1893_v41  ;;  %v2003_v11 = vand.u32 127, %v2002_v17 }
 0x2a1   : > { %v1948_v33 = vadd.f32 %v1947_v31, %v1946_v57  ;;  %v1932_v7 = vmul.f32 %v2449_v30, %v1892_v50  ;;  %v1895_v21 = vmul.f32 %v1887_v55, %v1854_v23  ;;  %v1853_v26 = vadd.f32 %v2960_v0, %v1844_v32  ;;  %v2451_v14 = vpop.eup %2450 }
 0x2a2   : > { %v1847_v37 = vmul.f32 2.0, %v1828_v5  ;;  %v1827_v38 = vsub.f32 %v1772_v24, %v1803_v22  ;;  %v1951_v40 = vsel %vm262_vm0, %v1933_v60, 0.0  ;;  %vm2005_vm1 = vcmp.eq.s32.totalorder %v2003_v11, 1 }
 0x2a3   : > { %v1949_v43 = vsel %vm262_vm0, %v1932_v7, 0.0  ;;  %v1894_v52 = vmul.f32 %v1886_v35, %v1853_v26  ;;  %v2453_v34 = vpop.eup %2452  ;;  %v1935_v46 = vmul.f32 %v2451_v14, %v1895_v21  ;;  %vm2004_vm2 = vcmp.eq.s32.totalorder %v2003_v11, 0 }
 0x2a4   : > { %v1950_v51 = vadd.f32 %v1949_v43, %v1948_v33  ;;  %v1856_v53 = vadd.f32 %v2960_v0, %v1847_v37  ;;  %v1846_v25 = vmul.f32 2.0, %v1827_v38 }
 0x2a5   : > { %v1934_v61 = vmul.f32 %v2453_v34, %v1894_v52  ;;  %v2455_v45 = vpop.eup %2454  ;;  %v1955_v1 = vsel %vm262_vm0, %v1935_v46, 0.0 }
 0x2a6   : > { %v1897_v27 = vmul.f32 %v1889_v9, %v1856_v53  ;;  %v1855_v39 = vadd.f32 %v2960_v0, %v1846_v25  ;;  %v1952_v44 = vadd.f32 %v1951_v40, %v1950_v51  ;;  %v1994_v0 = vpop.xlane.xlu1 %1993 }
 0x2a7   : > { %v1953_v62 = vsel %vm262_vm0, %v1934_v61, 0.0  ;;  %v2457_v13 = vpop.eup %2456  ;;  %v1995_v16 = vrot.slane %v1994_v0, 4 }
 0x2a8   : > { %v1896_v54 = vmul.f32 %v1888_v58, %v1855_v39  ;;  %v1954_v47 = vadd.f32 %v1953_v62, %v1952_v44  ;;  %v1937_v36 = vmul.f32 %v2455_v45, %v1897_v27 }
 0x2a9   : > { %v1996_v18 = vadd.f32 %v1995_v16, %v1994_v0 }
 0x2aa   : > { %v1936_v63 = vmul.f32 %v2457_v13, %v1896_v54  ;;  %v1956_v6 = vadd.f32 %v1955_v1, %v1954_v47  ;;  %v1959_v10 = vsel %vm262_vm0, %v1937_v36, 0.0 }
 0x2ab   : > { %v1997_v22 = vrot.slane %v1996_v18, 2 }
 0x2ac   : > { %v1957_v59 = vsel %vm262_vm0, %v1936_v63, 0.0 }
 0x2ad   : > { %v1958_v8 = vadd.f32 %v1957_v59, %v1956_v6  ;;  %v1998_v28 = vadd.f32 %v1997_v22, %v1996_v18 }
 0x2af   : > { %v1960_v12 = vadd.f32 %v1959_v10, %v1958_v8  ;;  %v1999_v49 = vrot.slane %v1998_v28, 1 }
 0x2b1   : > { %1961 = vadd.xlane.f32.xlu0 %v1960_v12  ;;  %v2000_v55 = vadd.f32 %v1999_v49, %v1998_v28 }
 0x33a   : > { %v1962_v29 = vpop.xlane.xlu0 %1961 }
 0x33b   : > { %v1963_v2 = vrot.slane %v1962_v29, 4 }
 0x33d   : > { %v1964_v3 = vadd.f32 %v1963_v2, %v1962_v29 }
 0x33f   : > { %v1965_v48 = vrot.slane %v1964_v3, 2 }
 0x341   : > { %v1966_v41 = vadd.f32 %v1965_v48, %v1964_v3 }
 0x343   : > { %v1967_v15 = vrot.slane %v1966_v41, 1 }
 0x345   : > { %v1968_v4 = vadd.f32 %v1967_v15, %v1966_v41 }
 0x347   : > { %2395 = vpush %v1968_v4 }
 0x348   : > { %2397 = vpush %v2000_v55 }
 0x378   : > { %s2396_s25 = spop %2395 }
 0x379   : > { %v2008_v56 = vstv %s2396_s25  ;;  %s2398_s14 = spop %2397 }
 0x37a   : > { %v2006_v19 = vstv %s2398_s14 }
 0x37b   : > { %v2007_v30 = vsel %vm2005_vm1, %v2006_v19, 0.0 }
 0x37c   : > { %v2009_v42 = vsel %vm2004_vm2, %v2008_v56, %v2007_v30 }
 0x37d   : > { %2010 = vst [vmem:[%s245_s19] sm:$0xff] %v2009_v42 }
 0x37e PF: > { %p21_p8 = scmp.ge.s32.totalorder %s2595_s27, 4   ;;  %s3083_s23 = smov %s2526_s24 }
 0x37f   : > { %s3084_s24 = smov %s2530_s0  ;;  %s3085_s0 = smov %s2605_s30 }
 0x380   : > { %s3086_s25 = smov %s2595_s27  ;;  %23 = sbr.rel (!%p21_p8) target bundleno = 18 (0x12), region = 79 }
 0x385   :  { %2030 = vsyncpa [#allocation6], 1 }
 0x386   :  { %2032 = vsyncpa [#allocation6 + $0x1], 1 }

</bundles_post_ra>
